<compile_context>
chip_gen: v7x
topology: tpu7x:2x2x1
jax: 0.10.0
libtpu: 0.0.40
codegen_flags: <defaults>
</compile_context>

<pallas_src>
import jax
import jax.numpy as jnp
from jax.experimental import pallas as pl
from jax.experimental.pallas import tpu as pltpu

EMB_DIM = 64
HIDDEN_DIM = 4 * EMB_DIM          # 256
MIN_BLOCK_M = 256                 # preferred lower bound on rows per grid step
MAX_BLOCK_M = 2048                # upper bound (keeps VMEM residency ~3.5 MiB)


def ffn_kernel(x_ref, w1_ref, b1_ref, w2_ref, b2_ref, o_ref):
    """One row-tile of the fused FFN: (block_m, 64) -> (block_m, 64)."""
    x = x_ref[...].astype(w1_ref.dtype)                          # bf16 operands for the MXU
    # Linear 1 (bf16 operands, f32 accumulation on the MXU) + bias + ReLU.
    h = jnp.dot(x, w1_ref[...], preferred_element_type=jnp.float32)   # (block_m, 256) f32
    h = jnp.maximum(h + b1_ref[...], 0.0)                              # VPU, f32
    # Linear 2 (bf16 operands, f32 accumulation) + bias.
    y = jnp.dot(h.astype(w2_ref.dtype), w2_ref[...],
                preferred_element_type=jnp.float32)                    # (block_m, 64) f32
    o_ref[...] = (y + b2_ref[...]).astype(o_ref.dtype)
    # Dropout(p=0.0) is the identity.
    # TODO(synk): a nonzero-p training dropout would use pltpu.prng_seed/prng_random_bits.


def _pick_block_m(m: int) -> int:
    """Row-tile size: large (256..2048 rows) to amortize the ~0.35us per-grid-step
    overhead and approach the HBM roofline, but never collapsing the grid below
    2 steps so the v7x megacore can split the row axis across both TensorCores."""
    if m <= 8:
        return m                                  # tiny input: one block == full dim
    half = pl.cdiv(m, 2)                          # largest tile that still gives 2 steps
    block = min(MAX_BLOCK_M, max(MIN_BLOCK_M, half))
    block = min(block, half)                      # keep >= 2 grid steps
    return max(8, ((block + 7) // 8) * 8)         # sublane-aligned (multiple of 8)


def make_params(key):
    """Synthetic parameters with torch nn.Linear-style init.

    Weights are stored pre-transposed as (in, out) so the kernel computes
    x @ W + b (== torch's x @ W.T + b), and kept in bf16 for the MXU.
    (Intentional precision tradeoff vs the torch f32 module, covered by tolerance.)
    """
    k1, k2, k3, k4 = jax.random.split(key, 4)
    bound1 = 1.0 / (EMB_DIM ** 0.5)
    bound2 = 1.0 / (HIDDEN_DIM ** 0.5)
    w1 = jax.random.uniform(k1, (EMB_DIM, HIDDEN_DIM), jnp.float32, -bound1, bound1)
    b1 = jax.random.uniform(k2, (1, HIDDEN_DIM), jnp.float32, -bound1, bound1)
    w2 = jax.random.uniform(k3, (HIDDEN_DIM, EMB_DIM), jnp.float32, -bound2, bound2)
    b2 = jax.random.uniform(k4, (1, EMB_DIM), jnp.float32, -bound2, bound2)
    return {
        "w1": w1.astype(jnp.bfloat16),
        "b1": b1,                       # biases stay f32 (added to the f32 accumulator)
        "w2": w2.astype(jnp.bfloat16),
        "b2": b2,
    }


def linear_layer_forward(x, params):
    """Equivalent of LinearLayer.forward(x) for x of shape (..., EMB_DIM)."""
    orig_shape = x.shape
    assert orig_shape[-1] == EMB_DIM
    m = 1
    for s in orig_shape[:-1]:
        m *= s
    x2 = x.reshape(m, EMB_DIM)          # no dtype change: activations stream in their own dtype

    block_m = _pick_block_m(m)
    n_tiles = pl.cdiv(m, block_m)       # final block may be partial: writeback is masked

    out_dtype = x2.dtype
    bytes_accessed = (
        m * EMB_DIM * (x2.dtype.itemsize + jnp.dtype(out_dtype).itemsize)
        + params["w1"].size * params["w1"].dtype.itemsize
        + params["w2"].size * params["w2"].dtype.itemsize
        + params["b1"].size * params["b1"].dtype.itemsize
        + params["b2"].size * params["b2"].dtype.itemsize
    )
    cost = pl.CostEstimate(
        flops=2 * m * (EMB_DIM * HIDDEN_DIM + HIDDEN_DIM * EMB_DIM),
        transcendentals=0,
        bytes_accessed=bytes_accessed,
    )

    out = pl.pallas_call(
        ffn_kernel,
        grid=(n_tiles,),
        in_specs=[
            pl.BlockSpec((block_m, EMB_DIM), lambda i: (i, 0)),       # x row tile (streamed)
            pl.BlockSpec((EMB_DIM, HIDDEN_DIM), lambda i: (0, 0)),    # W1 (VMEM-resident)
            pl.BlockSpec((1, HIDDEN_DIM), lambda i: (0, 0)),          # b1
            pl.BlockSpec((HIDDEN_DIM, EMB_DIM), lambda i: (0, 0)),    # W2 (VMEM-resident)
            pl.BlockSpec((1, EMB_DIM), lambda i: (0, 0)),             # b2
        ],
        out_specs=pl.BlockSpec((block_m, EMB_DIM), lambda i: (i, 0)),
        out_shape=jax.ShapeDtypeStruct((m, EMB_DIM), out_dtype),
        compiler_params=pltpu.CompilerParams(
            dimension_semantics=("parallel",)),                       # megacore-shardable
        cost_estimate=cost,
    )(x2, params["w1"], params["b1"], params["w2"], params["b2"])

    return out.reshape(orig_shape)


# --------------------------- pure-JAX reference -------------------------------
def _reference_forward(x, params):
    xf = x.astype(jnp.float32)
    w1 = params["w1"].astype(jnp.float32)
    w2 = params["w2"].astype(jnp.float32)
    h = jnp.maximum(xf @ w1 + params["b1"][0], 0.0)
    return h @ w2 + params["b2"][0]


if __name__ == "__main__":
    key = jax.random.PRNGKey(0)
    pkey, xkey = jax.random.split(key)
    params = make_params(pkey)

    # (B, T, D) = (4, 64, 64) -> 256 rows -> block_m = 128, two "parallel" grid steps
    # (exercises the >=2-step megacore guard even at demo size; partial-block masking
    #  is exercised automatically for any M not divisible by block_m).
    B, T = 4, 64
    x = jax.random.normal(xkey, (B, T, EMB_DIM), dtype=jnp.float32).astype(jnp.bfloat16)

    y = jax.block_until_ready(linear_layer_forward(x, params))
    ref = jax.block_until_ready(_reference_forward(x, params))

    assert y.shape == (B, T, EMB_DIM)
    assert y.dtype == x.dtype
    yf = y.astype(jnp.float32)
    max_err = jnp.max(jnp.abs(yf - ref))
    assert jnp.allclose(yf, ref, atol=3e-2, rtol=3e-2), f"mismatch vs JAX reference (max abs err {max_err})"

    print("KERNEL_OK")
</pallas_src>

<mosaic_0001>
module attributes {stable_mosaic.version = 11 : i64} {
  func.func @ffn_kernel(%arg0: i32, %arg1: memref<128x64xbf16, #tpu.memory_space<vmem>>, %arg2: memref<64x256xbf16, #tpu.memory_space<vmem>>, %arg3: memref<1x256xf32, #tpu.memory_space<vmem>>, %arg4: memref<256x64xbf16, #tpu.memory_space<vmem>>, %arg5: memref<1x64xf32, #tpu.memory_space<vmem>>, %arg6: memref<128x64xbf16, #tpu.memory_space<vmem>>) attributes {dimension_semantics = [#tpu.dimension_semantics<parallel>], iteration_bounds = array<i64: 2>, scalar_prefetch = 0 : i64, scratch_operands = 0 : i64, tpu.core_type = #tpu.core_type<tc>, window_params = [{transform_indices = @transform_0, window_bounds = array<i64: 128, 64>}, {pipeline_mode = #tpu.pipeline_mode<synchronous>, transform_indices = @transform_1, window_bounds = array<i64: 64, 256>}, {pipeline_mode = #tpu.pipeline_mode<synchronous>, transform_indices = @transform_2, window_bounds = array<i64: 1, 256>}, {pipeline_mode = #tpu.pipeline_mode<synchronous>, transform_indices = @transform_3, window_bounds = array<i64: 256, 64>}, {pipeline_mode = #tpu.pipeline_mode<synchronous>, transform_indices = @transform_4, window_bounds = array<i64: 1, 64>}, {transform_indices = @transform_5, window_bounds = array<i64: 128, 64>}]} {
    %c0 = arith.constant 0 : index
    %c0_0 = arith.constant 0 : index
    %0 = vector.load %arg1[%c0, %c0_0] : memref<128x64xbf16, #tpu.memory_space<vmem>>, vector<128x64xbf16>
    %c0_1 = arith.constant 0 : index
    %c0_2 = arith.constant 0 : index
    %1 = vector.load %arg2[%c0_1, %c0_2] : memref<64x256xbf16, #tpu.memory_space<vmem>>, vector<64x256xbf16>
    %cst = arith.constant dense<0.000000e+00> : vector<128x256xf32>
    %2 = tpu.matmul %0, %1, %cst {dimension_numbers = #tpu.dot_dimension_numbers<[1], [0], [0], [1], [0, 0, 1, 1], [], []>} : vector<128x64xbf16>, vector<64x256xbf16>, vector<128x256xf32> -> vector<128x256xf32>
    %c0_3 = arith.constant 0 : index
    %c0_4 = arith.constant 0 : index
    %3 = vector.load %arg3[%c0_3, %c0_4] : memref<1x256xf32, #tpu.memory_space<vmem>>, vector<1x256xf32>
    %4 = vector.broadcast %3 : vector<1x256xf32> to vector<128x256xf32>
    %5 = arith.addf %2, %4 : vector<128x256xf32>
    %cst_5 = arith.constant 0.000000e+00 : f32
    %6 = vector.broadcast %cst_5 : f32 to vector<128x256xf32>
    %7 = arith.maximumf %5, %6 : vector<128x256xf32>
    %8 = arith.truncf %7 : vector<128x256xf32> to vector<128x256xbf16>
    %c0_6 = arith.constant 0 : index
    %c0_7 = arith.constant 0 : index
    %9 = vector.load %arg4[%c0_6, %c0_7] : memref<256x64xbf16, #tpu.memory_space<vmem>>, vector<256x64xbf16>
    %cst_8 = arith.constant dense<0.000000e+00> : vector<128x64xf32>
    %10 = tpu.matmul %8, %9, %cst_8 {dimension_numbers = #tpu.dot_dimension_numbers<[1], [0], [0], [1], [0, 0, 1, 1], [], []>} : vector<128x256xbf16>, vector<256x64xbf16>, vector<128x64xf32> -> vector<128x64xf32>
    %c0_9 = arith.constant 0 : index
    %c0_10 = arith.constant 0 : index
    %11 = vector.load %arg5[%c0_9, %c0_10] : memref<1x64xf32, #tpu.memory_space<vmem>>, vector<1x64xf32>
    %12 = vector.broadcast %11 : vector<1x64xf32> to vector<128x64xf32>
    %13 = arith.addf %10, %12 : vector<128x64xf32>
    %14 = arith.truncf %13 : vector<128x64xf32> to vector<128x64xbf16>
    %c0_11 = arith.constant 0 : index
    %c0_12 = arith.constant 0 : index
    %15 = vector.load %arg6[%c0_11, %c0_12] : memref<128x64xbf16, #tpu.memory_space<vmem>>, vector<128x64xbf16>
    tpu.vector_store %arg6[%c0_11, %c0_12], %14 {strides = array<i32>} : memref<128x64xbf16, #tpu.memory_space<vmem>>, vector<128x64xbf16>,
    return
  }
  func.func @transform_0(%arg0: i32) -> (i32, i32) {
    %c0_i32 = arith.constant 0 : i32
    %c0_i32_0 = arith.constant 0 : i32
    return %arg0, %c0_i32 : i32, i32
  }
  func.func @transform_1(%arg0: i32) -> (i32, i32) {
    %c0_i32 = arith.constant 0 : i32
    %c0_i32_0 = arith.constant 0 : i32
    %c0_i32_1 = arith.constant 0 : i32
    return %c0_i32, %c0_i32_0 : i32, i32
  }
  func.func @transform_2(%arg0: i32) -> (i32, i32) {
    %c0_i32 = arith.constant 0 : i32
    %c0_i32_0 = arith.constant 0 : i32
    %c0_i32_1 = arith.constant 0 : i32
    return %c0_i32, %c0_i32_0 : i32, i32
  }
  func.func @transform_3(%arg0: i32) -> (i32, i32) {
    %c0_i32 = arith.constant 0 : i32
    %c0_i32_0 = arith.constant 0 : i32
    %c0_i32_1 = arith.constant 0 : i32
    return %c0_i32, %c0_i32_0 : i32, i32
  }
  func.func @transform_4(%arg0: i32) -> (i32, i32) {
    %c0_i32 = arith.constant 0 : i32
    %c0_i32_0 = arith.constant 0 : i32
    %c0_i32_1 = arith.constant 0 : i32
    return %c0_i32, %c0_i32_0 : i32, i32
  }
  func.func @transform_5(%arg0: i32) -> (i32, i32) {
    %c0_i32 = arith.constant 0 : i32
    %c0_i32_0 = arith.constant 0 : i32
    return %arg0, %c0_i32 : i32, i32
  }
}

</mosaic_0001>

<bundles_post_ra>
// kernel: tpu_custom_call.1
= control target key start
LH: loop header
LB: loop body
LE: loop exit
PB: predicated region body
PF: predicated region fallthrough
CT: control target
= control target key end

     0   :  { %s1148_s18 = smov 0   ;;  %s1364_s0 = inlined_call_operand.vmem [shape: bf16[256,64], index: 0, kind: input, shape index: {}]   ;;  %s1365_s1 = inlined_call_operand.vmem [shape: bf16[64,256], index: 1, kind: input, shape index: {}]   ;;  %s1366_s2 = inlined_call_operand.vmem [shape: f32[1,256], index: 2, kind: input, shape index: {}]   ;;  %s1367_s3 = inlined_call_operand.vmem [shape: bf16[256,64], index: 3, kind: input, shape index: {}]   ;;  %s1368_s4 = inlined_call_operand.vmem [shape: f32[1,64], index: 4, kind: input, shape index: {}]   ;;  %s1369_s5 = inlined_call_operand.vmem [shape: bf16[256,64], index: 5, kind: output, shape index: {}]  }
   0x1 LB: > { %s900_s19 = sadd.s32 4294967295, %s1115_s18   ;;  %p904_p0 = scmp.ge.s32.totalorder %s1115_s18, 1  ;;  %s1115_s18 = sphi %s1148_s18, %s15_s18  }
   0x2   : > { %p188_p1 = scmp.lt.s32.totalorder %s1115_s18, 3 }
   0x4   : > { %p189_p2 = pnand %p904_p0, %p188_p1 }
   0x5   : > { %v1073_v0 = vld [vmem:[%s1365_s1 + $0x4] ss:$8 sps:$4 sm:$0xff] (!%p189_p2)   ;;  %s905_s22 = sshll.u32 (!%p189_p2), %s900_s19, 4  ;;  %v1075_v1 = vld [vmem:[%s1365_s1] ss:$8 sps:$4 sm:$0xff] (!%p189_p2)   ;;  %v1117_v2 = vmov (!%p189_p2), 0   ;;  %v255_v33 = vlaneseq (!%p189_p2) }
   0x6   : > { %192 = sbr.rel (%p189_p2) target bundleno = 522 (0x20a), region = 40  ;;  %402 = vmatprep.mubr.bf16.mxu0 (!%p189_p2), %v1117_v2  ;;  %p217_p3 = scmp.lt.s32.totalorder (!%p189_p2), %s905_s22, 31  ;;  %370 = vmatprep.subr.bf16.mxu0 (!%p189_p2), %v1073_v0  ;;  %v1076_v3 = vld [vmem:[%s1365_s1 + $0x14] ss:$8 sps:$4 sm:$0xff] (!%p189_p2)   ;;  %v1078_v4 = vld [vmem:[%s1365_s1 + $0x10] ss:$8 sps:$4 sm:$0xff] (!%p189_p2)  }
   0x7   : > { %371 = vmatpush1.bf16.msra.mxu0 (!%p189_p2), %v1075_v1  ;;  %v1079_v5 = vld [vmem:[%s1365_s1 + $0x24] ss:$8 sps:$4 sm:$0xff] (!%p189_p2)   ;;  %v1081_v7 = vld [vmem:[%s1365_s1 + $0x20] ss:$8 sps:$4 sm:$0xff] (!%p189_p2)   ;;  %v1082_v8 = vld [vmem:[%s1365_s1 + $0x34] ss:$8 sps:$4 sm:$0xff] (!%p189_p2)  }
   0x8   : > { %372 = vmatprep.subr.bf16.mxu0 (!%p189_p2), %v1076_v3  ;;  %v1093_v6 = vld [vmem:[%s1367_s3 + $0x40] sm:$0xff] (!%p189_p2)   ;;  %v1084_v9 = vld [vmem:[%s1365_s1 + $0x30] ss:$8 sps:$4 sm:$0xff] (!%p189_p2)   ;;  %vm345_vm0 = vcmask (!%p189_p2), 523264   ;;  %v1095_v12 = vld [vmem:[%s1367_s3 + $0x48] sm:$0xff] (!%p189_p2)   ;;  %v256_v34 = vshrl.u32 (!%p189_p2), %v255_v33, 7 }
   0x9   : > { %1048 = vmatprep.subr.bf16.mxu1 (!%p189_p2), %v1093_v6  ;;  %v1094_v11 = vld [vmem:[%s1367_s3] sm:$0xff] (!%p189_p2)   ;;  %v1096_v13 = vld [vmem:[%s1367_s3 + $0x8] sm:$0xff] (!%p189_p2)   ;;  %v1097_v14 = vld [vmem:[%s1367_s3 + $0x50] sm:$0xff] (!%p189_p2)   ;;  %vm827_vm1 = vcmask (!%p189_p2), 519168  }
   0xa   : > { %1056 = vmatpush3.bf16.msra.mxu1 (!%p189_p2), %v1094_v11  ;;  %v1098_v16 = vld [vmem:[%s1367_s3 + $0x10] sm:$0xff] (!%p189_p2)   ;;  %v1099_v17 = vld [vmem:[%s1367_s3 + $0x58] sm:$0xff] (!%p189_p2)   ;;  %v1101_v19 = vld [vmem:[%s1367_s3 + $0x60] sm:$0xff] (!%p189_p2)   ;;  %v257_v35 = vsub.s32 (!%p189_p2), 0, %v256_v34  ;;  %v261_v37 = vsub.s32 (!%p189_p2), 1, %v256_v34 }
   0xb   : > { %373 = vmatpush1.bf16.msra.mxu0 (!%p189_p2), %v1078_v4  ;;  %1049 = vmatprep.subr.bf16.mxu1 (!%p189_p2), %v1095_v12  ;;  %v1100_v18 = vld [vmem:[%s1367_s3 + $0x18] sm:$0xff] (!%p189_p2)   ;;  %v1102_v21 = vld [vmem:[%s1367_s3 + $0x20] sm:$0xff] (!%p189_p2)   ;;  %v1103_v22 = vld [vmem:[%s1367_s3 + $0x68] sm:$0xff] (!%p189_p2)  }
   0xc   : > { %374 = vmatprep.subr.bf16.mxu0 (!%p189_p2), %v1079_v5  ;;  %v1104_v28 = vld [vmem:[%s1367_s3 + $0x28] sm:$0xff] (!%p189_p2)   ;;  %v1105_v29 = vld [vmem:[%s1367_s3 + $0x70] sm:$0xff] (!%p189_p2)   ;;  %v1107_v31 = vld [vmem:[%s1367_s3 + $0x78] sm:$0xff] (!%p189_p2)  }
   0xd   : > { %s1371_s22 = smov (!%p217_p3, %s905_s22), 31  ;;  %v1106_v30 = vld [vmem:[%s1367_s3 + $0x30] sm:$0xff]   ;;  %v1108_v32 = vld [vmem:[%s1367_s3 + $0x38] sm:$0xff]   ;;  %v253_v36 = vld [vmem:[%s1366_s2] sm:$0x3] }
   0xe   : > { %s906_s6 = sshll.u32 %s1371_s22, 2  ;;  %1057 = vmatpush3.bf16.msra.mxu1 %v1096_v13  ;;  %v1265_v38 = vrot.slane %v253_v36, %v257_v35  ;;  %v1267_v39 = vrot.slane %v253_v36, %v261_v37 }
   0xf   : > { %s1183_s11 = scalar_lea.vmem %s1364_s0, %s906_s6  ;;  %375 = vmatpush1.bf16.msra.mxu0 %v1081_v7  ;;  %1050 = vmatprep.subr.bf16.mxu1 %v1097_v14  ;;  %s1312_s10 = scalar_lea.vmem %s1369_s5, %s906_s6 }
  0x10   : > { %376 = vmatprep.subr.bf16.mxu0 %v1082_v8  ;;  %v1085_v10 = vld [vmem:[%s1183_s11] sm:$0xff]   ;;  %v1086_v15 = vld [vmem:[%s1183_s11 + $0x8] sm:$0xff]   ;;  %v1087_v20 = vld [vmem:[%s1183_s11 + $0x10] sm:$0xff]  }
  0x11   : > { %v1088_v23 = vld [vmem:[%s1183_s11 + $0x18] sm:$0xff]   ;;  %v1089_v24 = vld [vmem:[%s1183_s11 + $0x20] sm:$0xff]   ;;  %v1090_v25 = vld [vmem:[%s1183_s11 + $0x28] sm:$0xff]  }
  0x12   : > { %1058 = vmatpush3.bf16.msra.mxu1 %v1098_v16  ;;  %v1091_v26 = vld [vmem:[%s1183_s11 + $0x30] sm:$0xff]   ;;  %v1092_v27 = vld [vmem:[%s1183_s11 + $0x38] sm:$0xff]  }
  0x13   : > { %377 = vmatpush1.bf16.msra.mxu0 %v1084_v9  ;;  %1051 = vmatprep.subr.bf16.mxu1 %v1099_v17 }
  0x14   : > { %984 = vmatprep.subr.bf16.mxu0 %v1093_v6 }
  0x16   : > { %925 = vmatmul.mubr.msk.bf16.vlgmr.msra.gmra.mrb[0].mxu0 %vm345_vm0, %v1085_v10  ;;  %1059 = vmatpush3.bf16.msra.mxu1 %v1100_v18 }
  0x17   : > { %412 = vmatprep.mubr.bf16.mxu0 %v1117_v2  ;;  %985 = vmatpush3.bf16.msra.mxu0 %v1094_v11 }
  0x18   : > { %986 = vmatprep.subr.bf16.mxu0 %v1095_v12  ;;  %1052 = vmatprep.subr.bf16.mxu1 %v1101_v19 }
  0x1a   : > { %1060 = vmatpush3.bf16.msra.mxu1 %v1102_v21 }
  0x1b   : > { %987 = vmatpush3.bf16.msra.mxu0 %v1096_v13  ;;  %1053 = vmatprep.subr.bf16.mxu1 %v1103_v22 }
  0x1c   : > { %988 = vmatprep.subr.bf16.mxu0 %v1097_v14 }
  0x1e   : > { %926 = vmatmul.mubr.msk.bf16.gmra.mrb[4].mxu0 %vm345_vm0, %v1086_v15  ;;  %1061 = vmatpush3.bf16.msra.mxu1 %v1104_v28 }
  0x1f   : > { %422 = vmatprep.mubr.bf16.mxu0 %v1117_v2  ;;  %989 = vmatpush3.bf16.msra.mxu0 %v1098_v16 }
  0x20   : > { %990 = vmatprep.subr.bf16.mxu0 %v1099_v17  ;;  %1054 = vmatprep.subr.bf16.mxu1 %v1105_v29 }
  0x22   : > { %1062 = vmatpush3.bf16.msra.mxu1 %v1106_v30 }
  0x23   : > { %991 = vmatpush3.bf16.msra.mxu0 %v1100_v18  ;;  %1055 = vmatprep.subr.bf16.mxu1 %v1107_v31 }
  0x24   : > { %992 = vmatprep.subr.bf16.mxu0 %v1101_v19 }
  0x26   : > { %927 = vmatmul.mubr.msk.bf16.gmra.mrb[8].mxu0 %vm345_vm0, %v1087_v20  ;;  %1063 = vmatpush3.bf16.msra.mxu1 %v1108_v32 }
  0x27   : > { %432 = vmatprep.mubr.bf16.mxu0 %v1117_v2  ;;  %993 = vmatpush3.bf16.msra.mxu0 %v1102_v21 }
  0x28   : > { %994 = vmatprep.subr.bf16.mxu0 %v1103_v22 }
  0x2b   : > { %995 = vmatpush3.bf16.msra.mxu0 %v1104_v28 }
  0x2c   : > { %996 = vmatprep.subr.bf16.mxu0 %v1105_v29 }
  0x2e   : > { %928 = vmatmul.mubr.msk.bf16.gmra.mrb[12].mxu0 %vm345_vm0, %v1088_v23 }
  0x2f   : > { %442 = vmatprep.mubr.bf16.mxu0 %v1117_v2  ;;  %997 = vmatpush3.bf16.msra.mxu0 %v1106_v30 }
  0x30   : > { %998 = vmatprep.subr.bf16.mxu0 %v1107_v31 }
  0x33   : > { %999 = vmatpush3.bf16.msra.mxu0 %v1108_v32 }
  0x36   : > { %929 = vmatmul.mubr.msk.bf16.gmra.mrb[16].mxu0 %vm345_vm0, %v1089_v24 }
  0x37   : > { %452 = vmatprep.mubr.bf16.mxu0 %v1117_v2 }
  0x3e   : > { %930 = vmatmul.mubr.msk.bf16.gmra.mrb[20].mxu0 %vm345_vm0, %v1090_v25 }
  0x3f   : > { %462 = vmatprep.mubr.bf16.mxu0 %v1117_v2 }
  0x46   : > { %931 = vmatmul.mubr.msk.bf16.gmra.mrb[24].mxu0 %vm345_vm0, %v1091_v26 }
  0x47   : > { %472 = vmatprep.mubr.bf16.mxu0 %v1117_v2 }
  0x4e   : > { %932 = vmatmul.mubr.msk.bf16.gmra.mrb[28].mxu0 %vm345_vm0, %v1092_v27 }
  0xe9   : > { %v404_v40 = vpop.f32.mrb[0].mxu0 }
  0xea   : > { %v405_v41 = vadd.f32 %v404_v40, %v1265_v38  ;;  %v406_v42 = vpop.f32.mrb[1].mxu0 }
  0xeb   : > { %v407_v43 = vadd.f32 %v406_v42, %v1267_v39  ;;  %v408_v44 = vpop.f32.mrb[2].mxu0 }
  0xec   : > { %v409_v45 = vadd.f32 %v408_v44, %v1265_v38  ;;  %v410_v46 = vpop.f32.mrb[3].mxu0  ;;  %v483_v48 = vmax.f32 %v405_v41, 0.0 }
  0xed   : > { %v411_v47 = vadd.f32 %v410_v46, %v1267_v39  ;;  %v484_v50 = vmax.f32 %v407_v43, 0.0 }
  0xee   : > { %v485_v49 = vmax.f32 %v409_v45, 0.0 }
  0xef   : > { %v486_v51 = vmax.f32 %v411_v47, 0.0 }
  0xf0   : > { %v515_v52 = vpack.c.bf16 %v485_v49, %v483_v48 }
  0xf1   : > { %v516_v53 = vpack.c.bf16 %v486_v51, %v484_v50  ;;  %v414_v54 = vpop.f32.mrb[4].mxu0 }
  0xf2   : > { %v415_v55 = vadd.f32 %v414_v54, %v1265_v38  ;;  %v416_v56 = vpop.f32.mrb[5].mxu0 }
  0xf3   : > { %v417_v57 = vadd.f32 %v416_v56, %v1267_v39  ;;  %v418_v58 = vpop.f32.mrb[6].mxu0  ;;  %698 = vmatprep.mubr.bf16.mxu0 %v516_v53 }
  0xf4   : > { %v419_v59 = vadd.f32 %v418_v58, %v1265_v38  ;;  %v420_v60 = vpop.f32.mrb[7].mxu0  ;;  %699 = vmatmul.mubr.bf16.vlgmr.msra.gmra.mrb[32].mxu0 %v515_v52  ;;  %v487_v62 = vmax.f32 %v415_v55, 0.0 }
  0xf5   : > { %v421_v61 = vadd.f32 %v420_v60, %v1267_v39  ;;  %v488_v0 = vmax.f32 %v417_v57, 0.0 }
  0xf6   : > { %v489_v63 = vmax.f32 %v419_v59, 0.0 }
  0xf7   : > { %v490_v1 = vmax.f32 %v421_v61, 0.0 }
  0xf8   : > { %v517_v2 = vpack.c.bf16 %v489_v63, %v487_v62 }
  0xf9   : > { %v424_v3 = vpop.f32.mrb[8].mxu0  ;;  %v518_v4 = vpack.c.bf16 %v490_v1, %v488_v0 }
  0xfa   : > { %v425_v5 = vadd.f32 %v424_v3, %v1265_v38  ;;  %v426_v6 = vpop.f32.mrb[9].mxu0 }
  0xfb   : > { %v427_v7 = vadd.f32 %v426_v6, %v1267_v39  ;;  %v428_v8 = vpop.f32.mrb[10].mxu0  ;;  %706 = vmatprep.mubr.bf16.mxu1 %v518_v4 }
  0xfc   : > { %v429_v9 = vadd.f32 %v428_v8, %v1265_v38  ;;  %v430_v10 = vpop.f32.mrb[11].mxu0  ;;  %707 = vmatmul.mubr.bf16.vlgmr.msra.gmra.mrb[0].mxu1 %v517_v2  ;;  %v491_v12 = vmax.f32 %v425_v5, 0.0 }
  0xfd   : > { %v431_v11 = vadd.f32 %v430_v10, %v1267_v39  ;;  %v492_v14 = vmax.f32 %v427_v7, 0.0 }
  0xfe   : > { %v493_v13 = vmax.f32 %v429_v9, 0.0 }
  0xff   : > { %v494_v15 = vmax.f32 %v431_v11, 0.0 }
 0x100   : > { %v519_v16 = vpack.c.bf16 %v493_v13, %v491_v12 }
 0x101   : > { %v520_v17 = vpack.c.bf16 %v494_v15, %v492_v14  ;;  %v434_v18 = vpop.f32.mrb[12].mxu0 }
 0x102   : > { %v435_v19 = vadd.f32 %v434_v18, %v1265_v38  ;;  %v436_v20 = vpop.f32.mrb[13].mxu0 }
 0x103   : > { %v437_v21 = vadd.f32 %v436_v20, %v1267_v39  ;;  %v438_v22 = vpop.f32.mrb[14].mxu0  ;;  %714 = vmatprep.mubr.bf16.mxu1 %v520_v17 }
 0x104   : > { %v439_v23 = vadd.f32 %v438_v22, %v1265_v38  ;;  %v440_v24 = vpop.f32.mrb[15].mxu0  ;;  %715 = vmatmul.mubr.bf16.gmra.mrb[4].mxu1 %v519_v16  ;;  %v495_v26 = vmax.f32 %v435_v19, 0.0 }
 0x105   : > { %v441_v25 = vadd.f32 %v440_v24, %v1267_v39  ;;  %v496_v28 = vmax.f32 %v437_v21, 0.0 }
 0x106   : > { %v497_v27 = vmax.f32 %v439_v23, 0.0 }
 0x107   : > { %v498_v29 = vmax.f32 %v441_v25, 0.0 }
 0x108   : > { %v521_v30 = vpack.c.bf16 %v497_v27, %v495_v26  ;;  %v1304_v27 = vld [vmem:[%s1368_s4] ss:$0 sm:$0xff] }
 0x109   : > { %v522_v31 = vpack.c.bf16 %v498_v29, %v496_v28  ;;  %v444_v32 = vpop.f32.mrb[16].mxu0 }
 0x10a   : > { %v445_v33 = vadd.f32 %v444_v32, %v1265_v38  ;;  %v446_v34 = vpop.f32.mrb[17].mxu0 }
 0x10b   : > { %v447_v35 = vadd.f32 %v446_v34, %v1267_v39  ;;  %v448_v36 = vpop.f32.mrb[18].mxu0  ;;  %722 = vmatprep.mubr.bf16.mxu1 %v522_v31 }
 0x10c   : > { %v449_v37 = vadd.f32 %v448_v36, %v1265_v38  ;;  %v450_v40 = vpop.f32.mrb[19].mxu0  ;;  %723 = vmatmul.mubr.bf16.gmra.mrb[8].mxu1 %v521_v30  ;;  %v499_v42 = vmax.f32 %v445_v33, 0.0 }
 0x10d   : > { %v451_v41 = vadd.f32 %v450_v40, %v1267_v39  ;;  %v500_v44 = vmax.f32 %v447_v35, 0.0 }
 0x10e   : > { %v501_v43 = vmax.f32 %v449_v37, 0.0 }
 0x10f   : > { %v502_v45 = vmax.f32 %v451_v41, 0.0 }
 0x110   : > { %v523_v46 = vpack.c.bf16 %v501_v43, %v499_v42 }
 0x111   : > { %v524_v47 = vpack.c.bf16 %v502_v45, %v500_v44  ;;  %v454_v48 = vpop.f32.mrb[20].mxu0 }
 0x112   : > { %v455_v49 = vadd.f32 %v454_v48, %v1265_v38  ;;  %v456_v50 = vpop.f32.mrb[21].mxu0 }
 0x113   : > { %v457_v51 = vadd.f32 %v456_v50, %v1267_v39  ;;  %v458_v52 = vpop.f32.mrb[22].mxu0  ;;  %730 = vmatprep.mubr.bf16.mxu1 %v524_v47 }
 0x114   : > { %v459_v53 = vadd.f32 %v458_v52, %v1265_v38  ;;  %v460_v54 = vpop.f32.mrb[23].mxu0  ;;  %731 = vmatmul.mubr.bf16.gmra.mrb[12].mxu1 %v523_v46  ;;  %v503_v56 = vmax.f32 %v455_v49, 0.0 }
 0x115   : > { %v461_v55 = vadd.f32 %v460_v54, %v1267_v39  ;;  %v504_v58 = vmax.f32 %v457_v51, 0.0 }
 0x116   : > { %v505_v57 = vmax.f32 %v459_v53, 0.0 }
 0x117   : > { %v506_v59 = vmax.f32 %v461_v55, 0.0 }
 0x118   : > { %v525_v60 = vpack.c.bf16 %v505_v57, %v503_v56 }
 0x119   : > { %v526_v61 = vpack.c.bf16 %v506_v59, %v504_v58  ;;  %v464_v62 = vpop.f32.mrb[24].mxu0 }
 0x11a   : > { %v465_v63 = vadd.f32 %v464_v62, %v1265_v38  ;;  %v466_v0 = vpop.f32.mrb[25].mxu0 }
 0x11b   : > { %v467_v1 = vadd.f32 %v466_v0, %v1267_v39  ;;  %v468_v2 = vpop.f32.mrb[26].mxu0  ;;  %738 = vmatprep.mubr.bf16.mxu1 %v526_v61 }
 0x11c   : > { %v469_v3 = vadd.f32 %v468_v2, %v1265_v38  ;;  %v470_v4 = vpop.f32.mrb[27].mxu0  ;;  %739 = vmatmul.mubr.bf16.gmra.mrb[16].mxu1 %v525_v60  ;;  %v507_v6 = vmax.f32 %v465_v63, 0.0 }
 0x11d   : > { %v471_v5 = vadd.f32 %v470_v4, %v1267_v39  ;;  %v508_v8 = vmax.f32 %v467_v1, 0.0 }
 0x11e   : > { %v509_v7 = vmax.f32 %v469_v3, 0.0 }
 0x11f   : > { %v510_v9 = vmax.f32 %v471_v5, 0.0 }
 0x120   : > { %v527_v10 = vpack.c.bf16 %v509_v7, %v507_v6 }
 0x121   : > { %v528_v11 = vpack.c.bf16 %v510_v9, %v508_v8  ;;  %v474_v12 = vpop.f32.mrb[28].mxu0 }
 0x122   : > { %v475_v13 = vadd.f32 %v474_v12, %v1265_v38  ;;  %v476_v14 = vpop.f32.mrb[29].mxu0 }
 0x123   : > { %v477_v15 = vadd.f32 %v476_v14, %v1267_v39  ;;  %v478_v16 = vpop.f32.mrb[30].mxu0  ;;  %746 = vmatprep.mubr.bf16.mxu1 %v528_v11 }
 0x124   : > { %v479_v17 = vadd.f32 %v478_v16, %v1265_v38  ;;  %v480_v18 = vpop.f32.mrb[31].mxu0  ;;  %747 = vmatmul.mubr.bf16.gmra.mrb[20].mxu1 %v527_v10  ;;  %v511_v20 = vmax.f32 %v475_v13, 0.0 }
 0x125   : > { %v481_v19 = vadd.f32 %v480_v18, %v1267_v39  ;;  %v512_v22 = vmax.f32 %v477_v15, 0.0 }
 0x126   : > { %v513_v21 = vmax.f32 %v479_v17, 0.0 }
 0x127   : > { %v514_v23 = vmax.f32 %v481_v19, 0.0 }
 0x128   : > { %v529_v24 = vpack.c.bf16 %v513_v21, %v511_v20 }
 0x129   : > { %v530_v25 = vpack.c.bf16 %v514_v23, %v512_v22 }
 0x12b   : > { %754 = vmatprep.mubr.bf16.mxu1 %v530_v25 }
 0x12c   : > { %755 = vmatmul.mubr.bf16.gmra.mrb[24].mxu1 %v529_v24 }
 0x1c7   : > { %v1000_v26 = vpop.f32.mrb[32].mxu0 }
 0x1c8   : > { %v1001_v38 = vpop.f32.mrb[33].mxu0 }
 0x1c9   : > { %v1002_v28 = vadd.f32 %v1001_v38, %v1000_v26  ;;  %v1003_v29 = vpop.f32.mrb[34].mxu0 }
 0x1ca   : > { %v1004_v30 = vpop.f32.mrb[35].mxu0 }
 0x1cb   : > { %v701_v39 = vadd.f32 %v1002_v28, %v1304_v27  ;;  %v1005_v31 = vadd.f32 %v1004_v30, %v1003_v29 }
 0x1cd   : > { %v968_v32 = vpack.c.bf16 %v701_v39, %v701_v39  ;;  %v704_v33 = vadd.f32 %v1005_v31, %v1304_v27 }
 0x1cf   : > { %828 = vst.msk [vmem:[%s1312_s10] sm:$0xf] %vm827_vm1, %v968_v32  ;;  %v969_v34 = vpack.c.bf16 %v704_v33, %v704_v33  ;;  %v1006_v35 = vpop.f32.mrb[0].mxu1 }
 0x1d0   : > { %v1007_v36 = vpop.f32.mrb[1].mxu1 }
 0x1d1   : > { %829 = vst.msk [vmem:[%s1312_s10 + $0x4] sm:$0xf] %vm827_vm1, %v969_v34  ;;  %v1008_v37 = vadd.f32 %v1007_v36, %v1006_v35  ;;  %v1009_v40 = vpop.f32.mrb[2].mxu1 }
 0x1d2   : > { %v1010_v41 = vpop.f32.mrb[3].mxu1 }
 0x1d3   : > { %v709_v42 = vadd.f32 %v1008_v37, %v1304_v27  ;;  %v1011_v43 = vadd.f32 %v1010_v41, %v1009_v40 }
 0x1d5   : > { %v970_v44 = vpack.c.bf16 %v709_v42, %v709_v42  ;;  %v712_v45 = vadd.f32 %v1011_v43, %v1304_v27 }
 0x1d7   : > { %830 = vst.msk [vmem:[%s1312_s10 + $0x8] sm:$0xf] %vm827_vm1, %v970_v44  ;;  %v971_v46 = vpack.c.bf16 %v712_v45, %v712_v45  ;;  %v1012_v47 = vpop.f32.mrb[4].mxu1 }
 0x1d8   : > { %v1013_v48 = vpop.f32.mrb[5].mxu1 }
 0x1d9   : > { %831 = vst.msk [vmem:[%s1312_s10 + $0xc] sm:$0xf] %vm827_vm1, %v971_v46  ;;  %v1014_v49 = vadd.f32 %v1013_v48, %v1012_v47  ;;  %v1015_v50 = vpop.f32.mrb[6].mxu1 }
 0x1da   : > { %v1016_v51 = vpop.f32.mrb[7].mxu1 }
 0x1db   : > { %v717_v52 = vadd.f32 %v1014_v49, %v1304_v27  ;;  %v1017_v53 = vadd.f32 %v1016_v51, %v1015_v50 }
 0x1dd   : > { %v972_v54 = vpack.c.bf16 %v717_v52, %v717_v52  ;;  %v720_v55 = vadd.f32 %v1017_v53, %v1304_v27 }
 0x1df   : > { %832 = vst.msk [vmem:[%s1312_s10 + $0x10] sm:$0xf] %vm827_vm1, %v972_v54  ;;  %v973_v56 = vpack.c.bf16 %v720_v55, %v720_v55  ;;  %v1018_v57 = vpop.f32.mrb[8].mxu1 }
 0x1e0   : > { %v1019_v58 = vpop.f32.mrb[9].mxu1 }
 0x1e1   : > { %833 = vst.msk [vmem:[%s1312_s10 + $0x14] sm:$0xf] %vm827_vm1, %v973_v56  ;;  %v1020_v59 = vadd.f32 %v1019_v58, %v1018_v57  ;;  %v1021_v60 = vpop.f32.mrb[10].mxu1 }
 0x1e2   : > { %v1022_v61 = vpop.f32.mrb[11].mxu1 }
 0x1e3   : > { %v725_v62 = vadd.f32 %v1020_v59, %v1304_v27  ;;  %v1023_v63 = vadd.f32 %v1022_v61, %v1021_v60 }
 0x1e5   : > { %v974_v0 = vpack.c.bf16 %v725_v62, %v725_v62  ;;  %v728_v1 = vadd.f32 %v1023_v63, %v1304_v27 }
 0x1e7   : > { %834 = vst.msk [vmem:[%s1312_s10 + $0x18] sm:$0xf] %vm827_vm1, %v974_v0  ;;  %v975_v2 = vpack.c.bf16 %v728_v1, %v728_v1  ;;  %v1024_v3 = vpop.f32.mrb[12].mxu1 }
 0x1e8   : > { %v1025_v4 = vpop.f32.mrb[13].mxu1 }
 0x1e9   : > { %835 = vst.msk [vmem:[%s1312_s10 + $0x1c] sm:$0xf] %vm827_vm1, %v975_v2  ;;  %v1026_v5 = vadd.f32 %v1025_v4, %v1024_v3  ;;  %v1027_v6 = vpop.f32.mrb[14].mxu1 }
 0x1ea   : > { %v1028_v7 = vpop.f32.mrb[15].mxu1 }
 0x1eb   : > { %v733_v8 = vadd.f32 %v1026_v5, %v1304_v27  ;;  %v1029_v9 = vadd.f32 %v1028_v7, %v1027_v6 }
 0x1ed   : > { %v976_v10 = vpack.c.bf16 %v733_v8, %v733_v8  ;;  %v736_v11 = vadd.f32 %v1029_v9, %v1304_v27 }
 0x1ef   : > { %836 = vst.msk [vmem:[%s1312_s10 + $0x20] sm:$0xf] %vm827_vm1, %v976_v10  ;;  %v977_v12 = vpack.c.bf16 %v736_v11, %v736_v11  ;;  %v1030_v13 = vpop.f32.mrb[16].mxu1 }
 0x1f0   : > { %v1031_v14 = vpop.f32.mrb[17].mxu1 }
 0x1f1   : > { %837 = vst.msk [vmem:[%s1312_s10 + $0x24] sm:$0xf] %vm827_vm1, %v977_v12  ;;  %v1032_v15 = vadd.f32 %v1031_v14, %v1030_v13  ;;  %v1033_v16 = vpop.f32.mrb[18].mxu1 }
 0x1f2   : > { %v1034_v17 = vpop.f32.mrb[19].mxu1 }
 0x1f3   : > { %v741_v18 = vadd.f32 %v1032_v15, %v1304_v27  ;;  %v1035_v19 = vadd.f32 %v1034_v17, %v1033_v16 }
 0x1f5   : > { %v978_v20 = vpack.c.bf16 %v741_v18, %v741_v18  ;;  %v744_v21 = vadd.f32 %v1035_v19, %v1304_v27 }
 0x1f7   : > { %838 = vst.msk [vmem:[%s1312_s10 + $0x28] sm:$0xf] %vm827_vm1, %v978_v20  ;;  %v979_v22 = vpack.c.bf16 %v744_v21, %v744_v21  ;;  %v1036_v23 = vpop.f32.mrb[20].mxu1 }
 0x1f8   : > { %v1037_v24 = vpop.f32.mrb[21].mxu1 }
 0x1f9   : > { %839 = vst.msk [vmem:[%s1312_s10 + $0x2c] sm:$0xf] %vm827_vm1, %v979_v22  ;;  %v1038_v25 = vadd.f32 %v1037_v24, %v1036_v23  ;;  %v1039_v26 = vpop.f32.mrb[22].mxu1 }
 0x1fa   : > { %v1040_v38 = vpop.f32.mrb[23].mxu1 }
 0x1fb   : > { %v749_v28 = vadd.f32 %v1038_v25, %v1304_v27  ;;  %v1041_v29 = vadd.f32 %v1040_v38, %v1039_v26 }
 0x1fd   : > { %v980_v30 = vpack.c.bf16 %v749_v28, %v749_v28  ;;  %v752_v39 = vadd.f32 %v1041_v29, %v1304_v27 }
 0x1ff   : > { %840 = vst.msk [vmem:[%s1312_s10 + $0x30] sm:$0xf] %vm827_vm1, %v980_v30  ;;  %v981_v31 = vpack.c.bf16 %v752_v39, %v752_v39  ;;  %v1042_v32 = vpop.f32.mrb[24].mxu1 }
 0x200   : > { %v1043_v33 = vpop.f32.mrb[25].mxu1 }
 0x201   : > { %841 = vst.msk [vmem:[%s1312_s10 + $0x34] sm:$0xf] %vm827_vm1, %v981_v31  ;;  %v1044_v34 = vadd.f32 %v1043_v33, %v1042_v32  ;;  %v1045_v35 = vpop.f32.mrb[26].mxu1 }
 0x202   : > { %v1046_v36 = vpop.f32.mrb[27].mxu1 }
 0x203   : > { %v757_v37 = vadd.f32 %v1044_v34, %v1304_v27  ;;  %v1047_v40 = vadd.f32 %v1046_v36, %v1045_v35 }
 0x205   : > { %v982_v41 = vpack.c.bf16 %v757_v37, %v757_v37  ;;  %v760_v42 = vadd.f32 %v1047_v40, %v1304_v27 }
 0x207   : > { %842 = vst.msk [vmem:[%s1312_s10 + $0x38] sm:$0xf] %vm827_vm1, %v982_v41  ;;  %v983_v43 = vpack.c.bf16 %v760_v42, %v760_v42 }
 0x209   : > { %843 = vst.msk [vmem:[%s1312_s10 + $0x3c] sm:$0xf] %vm827_vm1, %v983_v43 }
 0x20a PF: > { %s15_s18 = sadd.s32 1, %s1115_s18  }
 0x20b   : > { %p12_p4 = scmp.ge.s32.totalorder %s15_s18, 4  }
 0x20d   :  { %14 = sbr.rel (!%p12_p4) target bundleno = 1 (0x1), region = 70 }

</bundles_post_ra>
